<compile_context>
chip_gen: v6e
topology: v6e:2x2x1
jax: 0.10.0
libtpu: 0.0.40
codegen_flags: <defaults>
</compile_context>

<pallas_src>
import jax
import jax.numpy as jnp
from jax.experimental import pallas as pl
from jax.experimental.pallas import tpu as pltpu


_BOUND = 127.0
_MIB = 1024 * 1024
_FUSED_CHUNK_F32_BYTES = 2 * _MIB   # per-chunk f32 intermediate budget inside the fused kernel
_FUSED_OVERHEAD_BYTES = 14 * _MIB   # chunk intermediates + compiler scratch headroom


def _cdiv(a, b):
    return -(-a // b)


def _hw_config():
    """Generation-aware VMEM budgets (v5e/v6e: 128 MiB VMEM per TC; v7x: 64 MiB)."""
    cap = 128 * _MIB
    try:
        info = pltpu.get_tpu_info()
        cap = int(getattr(info, "vmem_capacity_bytes", cap) or cap)
    except Exception:
        pass
    small_vmem = cap <= 80 * _MIB   # v7x-class TensorCore
    return {
        "vmem_capacity": cap,
        "tiled_vmem_limit": (36 if small_vmem else 48) * _MIB,
        "fused_vmem_limit": (44 if small_vmem else 92) * _MIB,
        "tile_target_bytes": (8 if small_vmem else 12) * _MIB,
    }


# ---------------------------------------------------------------------------
# Fused path: whole weight resident in VMEM once -> single HBM read + single HBM write
# (~5 B/elem of HBM traffic for f32 vs 9 B/elem for the two-pass tiled path).
# ---------------------------------------------------------------------------
def _make_fused_kernel(N, cm, n_chunks, chunk_starts):
    def kernel(x_hbm, o_hbm, amax_ref, x_vmem, o_vmem, in_sems, out_sems):
        # 1) One HBM read of W: per-chunk DMAs into the resident VMEM copy.  Every chunk is a
        #    full (cm, N) rectangle; when M % cm != 0 the last chunk's row window overlaps the
        #    previous one (idempotent for both max and the identical int8 rewrites below).
        in_copies = []
        for c, s in enumerate(chunk_starts):
            cp = pltpu.make_async_copy(x_hbm.at[pl.ds(s, cm)], x_vmem.at[c], in_sems.at[c])
            cp.start()
            in_copies.append(cp)
        for cp in in_copies:
            cp.wait()

        # 2) Global |max| over the resident copy, chunk by chunk (keeps f32 temps ~2 MiB).
        def amax_body(i, cur):
            blk = x_vmem[i].astype(jnp.float32)
            return jnp.maximum(cur, jnp.broadcast_to(jnp.max(jnp.abs(blk)), (1, 1)))

        amax11 = jax.lax.fori_loop(0, n_chunks, amax_body, jnp.zeros((1, 1), jnp.float32))
        amax_ref[...] = amax11
        # Hoisted broadcast of the scale (avoid re-broadcasting inside the loop).
        scale_b = jnp.broadcast_to(jnp.float32(_BOUND) / amax11, (cm, N))

        # 3) Quantize chunk by chunk into the resident int8 buffer.
        @pl.loop(0, n_chunks)
        def _(i):
            blk = x_vmem[i].astype(jnp.float32)
            q = jnp.clip(jnp.round(blk * scale_b), -_BOUND, _BOUND)
            o_vmem[i] = q.astype(jnp.int8)

        # 4) One HBM write of Wq (per-chunk DMAs; overlapping last-chunk rows rewrite
        #    byte-identical int8 values, which is harmless).
        out_copies = []
        for c, s in enumerate(chunk_starts):
            cp = pltpu.make_async_copy(o_vmem.at[c], o_hbm.at[pl.ds(s, cm)], out_sems.at[c])
            cp.start()
            out_copies.append(cp)
        for cp in out_copies:
            cp.wait()

    return kernel


def _fused_quantize(w, cfg, fused_chunk_rows=None):
    M, N = w.shape
    if fused_chunk_rows is not None:
        cm = min(int(fused_chunk_rows), M)
    else:
        cm = max(32, (_FUSED_CHUNK_F32_BYTES // (4 * N)) // 32 * 32)  # multiple of 32 rows
        cm = min(cm, M)
    n_chunks = _cdiv(M, cm)
    # Full (cm, N) windows; the last one overlaps the previous when M % cm != 0.
    chunk_starts = [min(c * cm, M - cm) for c in range(n_chunks)]

    wq, amax = pl.pallas_call(
        _make_fused_kernel(N, cm, n_chunks, chunk_starts),
        out_shape=(
            jax.ShapeDtypeStruct((M, N), jnp.int8),
            jax.ShapeDtypeStruct((1, 1), jnp.float32),
        ),
        in_specs=[pl.BlockSpec(memory_space=pl.ANY)],          # raw HBM ref; manual DMA
        out_specs=(
            pl.BlockSpec(memory_space=pl.ANY),                 # raw HBM ref; manual DMA
            pl.BlockSpec(memory_space=pltpu.MemorySpace.VMEM), # tiny amax output
        ),
        scratch_shapes=[
            pltpu.VMEM((n_chunks, cm, N), w.dtype),   # resident weight copy (native dtype)
            pltpu.VMEM((n_chunks, cm, N), jnp.int8),  # resident quantized output
            pltpu.SemaphoreType.DMA((n_chunks,)),
            pltpu.SemaphoreType.DMA((n_chunks,)),
        ],
        compiler_params=pltpu.CompilerParams(vmem_limit_bytes=cfg["fused_vmem_limit"]),
    )(w)
    return wq, amax[0, 0]


# ---------------------------------------------------------------------------
# Tiled two-pass path (weight too large for a single resident VMEM copy).
# ---------------------------------------------------------------------------
def _make_tile_amax_kernel(M, tm):
    needs_mask = (M % tm) != 0

    def kernel(x_ref, tmax_ref):
        ax = jnp.abs(x_ref[...].astype(jnp.float32))
        if needs_mask:
            rows = jax.lax.broadcasted_iota(jnp.int32, ax.shape, 0) + pl.program_id(0) * tm
            ax = jnp.where(rows < M, ax, 0.0)   # zero out garbage rows of the tail block
        tmax_ref[...] = jnp.broadcast_to(jnp.max(ax), tmax_ref.shape)

    return kernel


def _tiled_quant_kernel(scale_ref, x_ref, o_ref):
    scale = scale_ref[0]                                        # (1,) f32 scalar in SMEM
    q = jnp.clip(jnp.round(x_ref[...].astype(jnp.float32) * scale), -_BOUND, _BOUND)
    # Padded garbage rows of a partial tail block get quantized too; this is safe only
    # because Pallas masks partial output-block stores back to HBM.
    o_ref[...] = q.astype(jnp.int8)


def _choose_tile_rows(M, N, itemsize, tile_target_bytes):
    """Full-width row blocks of ~tile_target_bytes of input.  tm is a multiple of 32 (int8
    output packs as (32,128) sublane tiles); prefer an even grid length so a v7x 2-TC
    'parallel' split stays balanced."""
    tm = tile_target_bytes // (itemsize * N)
    tm = max(32, (tm // 32) * 32)
    if tm >= M:
        return M
    g = _cdiv(M, tm)
    if g > 1 and g % 2 == 1:
        for cand in range(tm - 32, max(32, tm // 2) - 1, -32):
            if _cdiv(M, cand) % 2 == 0:
                return cand
    return tm


def _tiled_quantize(w, cfg, tile_rows=None):
    M, N = w.shape
    itemsize = jnp.dtype(w.dtype).itemsize
    if tile_rows is not None:
        tm = min(int(tile_rows), M)
    else:
        tm = _choose_tile_rows(M, N, itemsize, cfg["tile_target_bytes"])
    if tm < M:
        assert tm % 32 == 0, "row tile must be a multiple of 32 unless it covers all rows"
    grid = (_cdiv(M, tm),)
    params = pltpu.CompilerParams(
        dimension_semantics=("parallel",),
        vmem_limit_bytes=cfg["tiled_vmem_limit"],
    )

    # Pass 1: per-row-block |max| written as lane-dense (1, 8, 128) slabs -> fully parallel.
    tile_maxes = pl.pallas_call(
        _make_tile_amax_kernel(M, tm),
        out_shape=jax.ShapeDtypeStruct((grid[0], 8, 128), jnp.float32),
        grid_spec=pltpu.PrefetchScalarGridSpec(
            num_scalar_prefetch=0,
            grid=grid,
            in_specs=[pl.BlockSpec((tm, N), lambda i: (i, 0))],
            out_specs=pl.BlockSpec((1, 8, 128), lambda i: (i, 0, 0)),
        ),
        compiler_params=params,
    )(w)

    amax = jnp.max(tile_maxes)                        # tiny final reduce (a few KiB) in XLA
    scale = (jnp.float32(_BOUND) / amax).reshape(1)   # computed once; fed to pass 2 via SMEM

    # Pass 2: scale / round / clamp / int8-cast per row block, lane-dense int8 output.
    wq = pl.pallas_call(
        _tiled_quant_kernel,
        out_shape=jax.ShapeDtypeStruct((M, N), jnp.int8),
        grid_spec=pltpu.PrefetchScalarGridSpec(
            num_scalar_prefetch=0,
            grid=grid,
            in_specs=[
                pl.BlockSpec(memory_space=pltpu.MemorySpace.SMEM),  # (1,) f32 scale scalar
                pl.BlockSpec((tm, N), lambda i: (i, 0)),            # native-dtype row block
            ],
            out_specs=pl.BlockSpec((tm, N), lambda i: (i, 0)),
        ),
        compiler_params=params,
    )(scale, w)

    return wq, amax


# ---------------------------------------------------------------------------
# Public wrapper.
# ---------------------------------------------------------------------------
def linear_weight_quantize(w, *, tile_rows=None, force_tiled=False, fused_chunk_rows=None):
    """int8 symmetric weight quantization matching LinearWeightQuantizer.forward.

    Returns (w_int8, amax).  The weight is streamed in its native dtype; the f32 upcast of
    `input * scale` (matching PyTorch type promotion) happens per block inside the kernels.
    """
    assert w.ndim == 2, "expects a 2-D linear weight (out_features, in_features)"
    M, N = w.shape
    itemsize = jnp.dtype(w.dtype).itemsize
    cfg = _hw_config()

    # Fused single-read path whenever (native input + int8 output) fit in VMEM once, with
    # headroom for the in-kernel per-chunk f32 intermediates.
    fused_budget = cfg["fused_vmem_limit"] - _FUSED_OVERHEAD_BYTES
    fits_fused = (itemsize + 1) * M * N <= fused_budget
    if fits_fused and not force_tiled and tile_rows is None:
        return _fused_quantize(w, cfg, fused_chunk_rows=fused_chunk_rows)
    return _tiled_quantize(w, cfg, tile_rows=tile_rows)


def _reference(w):
    wf = w.astype(jnp.float32)
    amax = jnp.max(jnp.abs(wf))
    scale = jnp.float32(127.0) / amax
    q = jnp.clip(jnp.round(wf * scale), -127.0, 127.0).astype(jnp.int8)
    return q, amax


if __name__ == "__main__":
    key = jax.random.PRNGKey(0)
    k1, k2, k3, k4, k5 = jax.random.split(key, 5)

    cases = []

    # 1) Small f32 weight -> fused single-read path (single chunk).
    w1 = jax.random.normal(k1, (64, 256), dtype=jnp.float32)
    cases.append((w1, linear_weight_quantize(w1)))

    # 2) bf16 weight -> fused path streaming the native dtype (no wrapper upcast).
    w2 = (jax.random.normal(k2, (64, 384), dtype=jnp.float32) * 2.0).astype(jnp.bfloat16)
    cases.append((w2, linear_weight_quantize(w2)))

    # 3) Fused path with forced small chunks -> exercises multi-chunk + overlapping tail.
    w3 = jax.random.normal(k3, (200, 384), dtype=jnp.float32)
    cases.append((w3, linear_weight_quantize(w3, fused_chunk_rows=64)))

    # 4) Tiled two-pass path with a ragged final row block (200 % 64 != 0).
    w4 = jax.random.normal(k4, (200, 384), dtype=jnp.float32) * 0.5
    cases.append((w4, linear_weight_quantize(w4, tile_rows=64, force_tiled=True)))

    # 5) Tiled path, evenly divisible grid.
    w5 = jax.random.normal(k5, (96, 128), dtype=jnp.float32) * 3.0
    cases.append((w5, linear_weight_quantize(w5, tile_rows=32, force_tiled=True)))

    for w, (wq, amax) in cases:
        wq = jax.block_until_ready(wq)
        ref_q, ref_amax = _reference(w)
        assert wq.dtype == jnp.int8
        assert bool(jnp.all(wq == ref_q)), "int8 mismatch vs pure-JAX reference"
        assert bool(amax == ref_amax), "amax mismatch vs pure-JAX reference"

    print("KERNEL_OK")
</pallas_src>

<mosaic_0001>
module attributes {stable_mosaic.version = 11 : i64} {
  func.func @kernel(%arg0: memref<64x256xf32, #tpu.memory_space<any>>, %arg1: memref<64x256xi8, #tpu.memory_space<any>>, %arg2: memref<1x1xf32, #tpu.memory_space<vmem>>, %arg3: memref<1x64x256xf32, #tpu.memory_space<vmem>>, %arg4: memref<1x64x256xi8, #tpu.memory_space<vmem>>, %arg5: memref<1x!tpu.dma_semaphore, #tpu.memory_space<semaphore_mem>>, %arg6: memref<1x!tpu.dma_semaphore, #tpu.memory_space<semaphore_mem>>) attributes {dimension_semantics = [], scalar_prefetch = 0 : i64, scratch_operands = 4 : i64, tpu.core_type = #tpu.core_type<tc>} {
    %c0_i32 = arith.constant 0 : i32
    %c0_i32_0 = arith.constant 0 : i32
    %c0_i32_1 = arith.constant 0 : i32
    %c0_i32_2 = arith.constant 0 : i32
    %0 = tpu.memref_slice %arg0[%c0_i32_1, %c0_i32_2] : memref<64x256xf32, #tpu.memory_space<any>> -> memref<64x256xf32, #tpu.memory_space<any>>
    %c0_i32_3 = arith.constant 0 : i32
    %c0_i32_4 = arith.constant 0 : i32
    %1 = tpu.memref_slice %arg3[%c0_i32, %c0_i32_3, %c0_i32_4] : memref<1x64x256xf32, #tpu.memory_space<vmem>> -> memref<1x64x256xf32, #tpu.memory_space<vmem>>
    %2 = tpu.memref_squeeze %1 : memref<1x64x256xf32, #tpu.memory_space<vmem>> -> memref<64x256xf32, #tpu.memory_space<vmem>>
    %3 = tpu.memref_slice %arg5[%c0_i32_0] : memref<1x!tpu.dma_semaphore, #tpu.memory_space<semaphore_mem>> -> memref<1x!tpu.dma_semaphore, #tpu.memory_space<semaphore_mem>>
    %4 = tpu.memref_squeeze %3 : memref<1x!tpu.dma_semaphore, #tpu.memory_space<semaphore_mem>> -> memref<!tpu.dma_semaphore, #tpu.memory_space<semaphore_mem>>
    tpu.enqueue_dma source(%0 : memref<64x256xf32, #tpu.memory_space<any>>) target(%2 : memref<64x256xf32, #tpu.memory_space<vmem>>) target_semaphore(%4 : memref<!tpu.dma_semaphore, #tpu.memory_space<semaphore_mem>>)
    %c0_i32_5 = arith.constant 0 : i32
    %c0_i32_6 = arith.constant 0 : i32
    %c0_i32_7 = arith.constant 0 : i32
    %c0_i32_8 = arith.constant 0 : i32
    %5 = tpu.memref_slice %arg0[%c0_i32_7, %c0_i32_8] : memref<64x256xf32, #tpu.memory_space<any>> -> memref<64x256xf32, #tpu.memory_space<any>>
    %c0_i32_9 = arith.constant 0 : i32
    %c0_i32_10 = arith.constant 0 : i32
    %6 = tpu.memref_slice %arg3[%c0_i32_5, %c0_i32_9, %c0_i32_10] : memref<1x64x256xf32, #tpu.memory_space<vmem>> -> memref<1x64x256xf32, #tpu.memory_space<vmem>>
    %7 = tpu.memref_squeeze %6 : memref<1x64x256xf32, #tpu.memory_space<vmem>> -> memref<64x256xf32, #tpu.memory_space<vmem>>
    %8 = tpu.memref_slice %arg5[%c0_i32_6] : memref<1x!tpu.dma_semaphore, #tpu.memory_space<semaphore_mem>> -> memref<1x!tpu.dma_semaphore, #tpu.memory_space<semaphore_mem>>
    %9 = tpu.memref_squeeze %8 : memref<1x!tpu.dma_semaphore, #tpu.memory_space<semaphore_mem>> -> memref<!tpu.dma_semaphore, #tpu.memory_space<semaphore_mem>>
    tpu.wait_dma2 semaphore(%9 : memref<!tpu.dma_semaphore, #tpu.memory_space<semaphore_mem>>) src(%5 : memref<64x256xf32, #tpu.memory_space<any>>) dst(%7 : memref<64x256xf32, #tpu.memory_space<vmem>>)
    %cst = arith.constant 0.000000e+00 : f32
    %10 = vector.broadcast %cst : f32 to vector<1x1xf32>
    %c0_i32_11 = arith.constant 0 : i32
    %11 = arith.index_cast %c0_i32_11 : i32 to index
    %c0 = arith.constant 0 : index
    %c0_12 = arith.constant 0 : index
    %12 = vector.load %arg3[%11, %c0, %c0_12] : memref<1x64x256xf32, #tpu.memory_space<vmem>>, vector<1x64x256xf32>
    %13 = vector.shape_cast %12 : vector<1x64x256xf32> to vector<64x256xf32>
    %14 = math.absf %13 : vector<64x256xf32>
    %15 = vector.shape_cast %14 : vector<64x256xf32> to vector<1x64x256xf32>
    %cst_13 = arith.constant dense<0xFF800000> : vector<1xf32>
    %16 = vector.multi_reduction <maximumf>, %15, %cst_13 [1, 2] : vector<1x64x256xf32> to vector<1xf32>
    %17 = vector.shape_cast %16 : vector<1xf32> to vector<1x1x1xf32>
    %18 = vector.extract %17[0, 0, 0] : f32 from vector<1x1x1xf32>
    %19 = vector.broadcast %18 : f32 to vector<1x1xf32>
    %20 = arith.maximumf %10, %19 : vector<1x1xf32>
    %c1_i32 = arith.constant 1 : i32
    %c0_14 = arith.constant 0 : index
    %c0_15 = arith.constant 0 : index
    %21 = vector.load %arg2[%c0_14, %c0_15] : memref<1x1xf32, #tpu.memory_space<vmem>>, vector<1x1xf32>
    tpu.vector_store %arg2[%c0_14, %c0_15], %20 {strides = array<i32>} : memref<1x1xf32, #tpu.memory_space<vmem>>, vector<1x1xf32>,
    %cst_16 = arith.constant 1.270000e+02 : f32
    %22 = vector.broadcast %cst_16 : f32 to vector<1x1xf32>
    %23 = arith.divf %22, %20 : vector<1x1xf32>
    %24 = vector.shape_cast %23 : vector<1x1xf32> to vector<1x1xf32>
    %25 = vector.broadcast %24 : vector<1x1xf32> to vector<64x256xf32>
    %c0_i32_17 = arith.constant 0 : i32
    %c1_i32_18 = arith.constant 1 : i32
    %26 = arith.muli %c0_i32_17, %c1_i32_18 : i32
    %c0_i32_19 = arith.constant 0 : i32
    %27 = arith.addi %c0_i32_19, %26 : i32
    %28 = arith.index_cast %27 : i32 to index
    %c0_20 = arith.constant 0 : index
    %c0_21 = arith.constant 0 : index
    %29 = vector.load %arg3[%28, %c0_20, %c0_21] : memref<1x64x256xf32, #tpu.memory_space<vmem>>, vector<1x64x256xf32>
    %30 = vector.shape_cast %29 : vector<1x64x256xf32> to vector<64x256xf32>
    %31 = arith.mulf %30, %25 : vector<64x256xf32>
    %32 = math.roundeven %31 : vector<64x256xf32>
    %cst_22 = arith.constant -1.270000e+02 : f32
    %cst_23 = arith.constant 1.270000e+02 : f32
    %33 = vector.broadcast %cst_22 : f32 to vector<64x256xf32>
    %34 = arith.maximumf %33, %32 : vector<64x256xf32>
    %35 = vector.broadcast %cst_23 : f32 to vector<64x256xf32>
    %36 = arith.minimumf %35, %34 : vector<64x256xf32>
    %37 = arith.fptosi %36 : vector<64x256xf32> to vector<64x256xi8>
    %38 = arith.index_cast %27 : i32 to index
    %c0_24 = arith.constant 0 : index
    %c0_25 = arith.constant 0 : index
    %39 = vector.load %arg4[%38, %c0_24, %c0_25] : memref<1x64x256xi8, #tpu.memory_space<vmem>>, vector<1x64x256xi8>
    %40 = vector.shape_cast %39 : vector<1x64x256xi8> to vector<64x256xi8>
    %41 = vector.shape_cast %37 : vector<64x256xi8> to vector<1x64x256xi8>
    tpu.vector_store %arg4[%38, %c0_24, %c0_25], %41 {strides = array<i32>} : memref<1x64x256xi8, #tpu.memory_space<vmem>>, vector<1x64x256xi8>,
    %c1_i32_26 = arith.constant 1 : i32
    %c0_i32_27 = arith.constant 0 : i32
    %c0_i32_28 = arith.constant 0 : i32
    %c0_i32_29 = arith.constant 0 : i32
    %c0_i32_30 = arith.constant 0 : i32
    %42 = tpu.memref_slice %arg4[%c0_i32_27, %c0_i32_29, %c0_i32_30] : memref<1x64x256xi8, #tpu.memory_space<vmem>> -> memref<1x64x256xi8, #tpu.memory_space<vmem>>
    %43 = tpu.memref_squeeze %42 : memref<1x64x256xi8, #tpu.memory_space<vmem>> -> memref<64x256xi8, #tpu.memory_space<vmem>>
    %c0_i32_31 = arith.constant 0 : i32
    %c0_i32_32 = arith.constant 0 : i32
    %44 = tpu.memref_slice %arg1[%c0_i32_31, %c0_i32_32] : memref<64x256xi8, #tpu.memory_space<any>> -> memref<64x256xi8, #tpu.memory_space<any>>
    %45 = tpu.memref_slice %arg6[%c0_i32_28] : memref<1x!tpu.dma_semaphore, #tpu.memory_space<semaphore_mem>> -> memref<1x!tpu.dma_semaphore, #tpu.memory_space<semaphore_mem>>
    %46 = tpu.memref_squeeze %45 : memref<1x!tpu.dma_semaphore, #tpu.memory_space<semaphore_mem>> -> memref<!tpu.dma_semaphore, #tpu.memory_space<semaphore_mem>>
    tpu.enqueue_dma source(%43 : memref<64x256xi8, #tpu.memory_space<vmem>>) target(%44 : memref<64x256xi8, #tpu.memory_space<any>>) target_semaphore(%46 : memref<!tpu.dma_semaphore, #tpu.memory_space<semaphore_mem>>)
    %c0_i32_33 = arith.constant 0 : i32
    %c0_i32_34 = arith.constant 0 : i32
    %c0_i32_35 = arith.constant 0 : i32
    %c0_i32_36 = arith.constant 0 : i32
    %47 = tpu.memref_slice %arg4[%c0_i32_33, %c0_i32_35, %c0_i32_36] : memref<1x64x256xi8, #tpu.memory_space<vmem>> -> memref<1x64x256xi8, #tpu.memory_space<vmem>>
    %48 = tpu.memref_squeeze %47 : memref<1x64x256xi8, #tpu.memory_space<vmem>> -> memref<64x256xi8, #tpu.memory_space<vmem>>
    %c0_i32_37 = arith.constant 0 : i32
    %c0_i32_38 = arith.constant 0 : i32
    %49 = tpu.memref_slice %arg1[%c0_i32_37, %c0_i32_38] : memref<64x256xi8, #tpu.memory_space<any>> -> memref<64x256xi8, #tpu.memory_space<any>>
    %50 = tpu.memref_slice %arg6[%c0_i32_34] : memref<1x!tpu.dma_semaphore, #tpu.memory_space<semaphore_mem>> -> memref<1x!tpu.dma_semaphore, #tpu.memory_space<semaphore_mem>>
    %51 = tpu.memref_squeeze %50 : memref<1x!tpu.dma_semaphore, #tpu.memory_space<semaphore_mem>> -> memref<!tpu.dma_semaphore, #tpu.memory_space<semaphore_mem>>
    tpu.wait_dma2 semaphore(%51 : memref<!tpu.dma_semaphore, #tpu.memory_space<semaphore_mem>>) src(%48 : memref<64x256xi8, #tpu.memory_space<vmem>>) dst(%49 : memref<64x256xi8, #tpu.memory_space<any>>)
    return
  }
}

</mosaic_0001>

<bundles_post_ra>
// kernel: tpu_custom_call.1
= control target key start
LH: loop header
LB: loop body
LE: loop exit
PB: predicated region body
PF: predicated region fallthrough
CT: control target
= control target key end

     0   :  { %8 = vsyncpa [#allocation7], 0  ;;  %s442_s9 = smov [#allocation2]   ;;  %s517_s0 = inlined_call_operand.hbm [shape: f32[64,256], index: 0, kind: input, shape index: {}]   ;;  %s518_s1 = inlined_call_operand.hbm [shape: s8[64,256], index: 1, kind: output, shape index: {0}]   ;;  %s519_s2 = inlined_call_operand.hbm [shape: f32[1,1], index: 2, kind: output, shape index: {1}]  }
   0x1   :  { %s16_s10 = sshll.u32 %s442_s9, 4  ;;  %s17_s10 = int_to_ptr.vmem [resolvable:$true] %s16_s10 }
   0x2   :  { %s384_s11 = scalar_lea.vmem %s17_s10, 2048  ;;  %p389_p1 = scmp.lt.s32.totalorder %s17_s10, %s17_s10 }
   0x3   :  { %p385_p0 = scmp.ne.s32.totalorder %s17_s10, %s384_s11  ;;  %p390_p2 = scmp.lt.s32.totalorder %s384_s11, %s384_s11 }
   0x5   :  { %p391_p3 = por %p390_p2, %p389_p1 }
   0x7   :  { %p392_p4 = pnand %p391_p3, %p385_p0 }
   0x9   :  { %395 = shalt.err (!%p392_p4)  }
   0xa   :  { %19 = dma.hbm_to_vmem [thread:$0]  %s517_s0, 2048, %s17_s10, [#allocation4] }
   0xb   :  { %436 = dma.done.wait [#allocation4], 2048 }
   0xc   :  { %437 = vsyncadd [#allocation4], 4294965248  ;;  %v463_v0 = vld [vmem:[#allocation2] sm:$0xff]  ;;  %v465_v1 = vld [vmem:[#allocation2 + $0x8] sm:$0xff]  ;;  %vm82_vm0 = vcmask 0   ;;  %s443_s14 = smov [#allocation3]  }
   0xd   :  { %v467_v2 = vld [vmem:[#allocation2 + $0x10] sm:$0xff]  ;;  %v469_v3 = vld [vmem:[#allocation2 + $0x18] sm:$0xff]  ;;  %v471_v4 = vld [vmem:[#allocation2 + $0x20] sm:$0xff]  ;;  %v40_v9 = vand.u32 2147483647, %v463_v0  ;;  %s237_s15 = sshll.u32 %s443_s14, 4  ;;  %s238_s15 = int_to_ptr.vmem [resolvable:$true] %s237_s15 }
   0xe   :  { %v473_v5 = vld [vmem:[#allocation2 + $0x28] sm:$0xff]  ;;  %v475_v6 = vld [vmem:[#allocation2 + $0x30] sm:$0xff]  ;;  %v477_v7 = vld [vmem:[#allocation2 + $0x38] sm:$0xff]  ;;  %v41_v13 = vand.u32 2147483647, %v465_v1  ;;  %s396_s16 = scalar_lea.vmem %s238_s15, 512  ;;  %p401_p6 = scmp.lt.s32.totalorder %s238_s15, %s238_s15 }
   0xf   :  { %v479_v8 = vld [vmem:[#allocation2 + $0x40] sm:$0xff]  ;;  %v482_v10 = vld [vmem:[#allocation2 + $0x48] sm:$0xff]  ;;  %v484_v11 = vld [vmem:[#allocation2 + $0x50] sm:$0xff]  ;;  %v42_v16 = vand.u32 2147483647, %v467_v2  ;;  %p397_p5 = scmp.ne.s32.totalorder %s238_s15, %s396_s16  ;;  %p402_p7 = scmp.lt.s32.totalorder %s396_s16, %s396_s16 }
  0x10   :  { %v486_v12 = vld [vmem:[#allocation2 + $0x58] sm:$0xff]  ;;  %v36_v14 = vld [vmem:[#allocation2 + $0x60] sm:$0xff]  ;;  %v37_v15 = vld [vmem:[#allocation2 + $0x68] sm:$0xff]  ;;  %v43_v17 = vand.u32 2147483647, %v469_v3 }
  0x11   :  { %v38_v18 = vld [vmem:[#allocation2 + $0x70] sm:$0xff]  ;;  %v39_v19 = vld [vmem:[#allocation2 + $0x78] sm:$0xff]  ;;  %v44_v20 = vand.u32 2147483647, %v471_v4  ;;  %v45_v21 = vand.u32 2147483647, %v473_v5  ;;  %p403_p8 = por %p402_p7, %p401_p6 }
  0x12   :  { %v46_v22 = vand.u32 2147483647, %v475_v6  ;;  %v47_v23 = vand.u32 2147483647, %v477_v7  ;;  %v48_v24 = vand.u32 2147483647, %v479_v8 }
  0x13   :  { %v49_v25 = vand.u32 2147483647, %v482_v10  ;;  %v50_v26 = vand.u32 2147483647, %v484_v11  ;;  %v51_v27 = vand.u32 2147483647, %v486_v12  ;;  %v56_v28 = vmax.f32.f32 %v40_v9, %v44_v20  ;;  %p404_p9 = pnand %p403_p8, %p397_p5 }
  0x14   :  { %v52_v29 = vand.u32 2147483647, %v36_v14  ;;  %v53_v30 = vand.u32 2147483647, %v37_v15  ;;  %v54_v31 = vand.u32 2147483647, %v38_v18  ;;  %v57_v32 = vmax.f32.f32 %v41_v13, %v45_v21 }
  0x15   :  { %v55_v33 = vand.u32 2147483647, %v39_v19  ;;  %v58_v34 = vmax.f32.f32 %v42_v16, %v46_v22  ;;  %v59_v35 = vmax.f32.f32 %v43_v17, %v47_v23  ;;  %v60_v36 = vmax.f32.f32 %v56_v28, %v48_v24 }
  0x16   :  { %v61_v37 = vmax.f32.f32 %v57_v32, %v49_v25 }
  0x17   :  { %v62_v38 = vmax.f32.f32 %v58_v34, %v50_v26  ;;  %v63_v39 = vmax.f32.f32 %v59_v35, %v51_v27  ;;  %v64_v40 = vmax.f32.f32 %v60_v36, %v52_v29 }
  0x18   :  { %v65_v41 = vmax.f32.f32 %v61_v37, %v53_v30 }
  0x19   :  { %v66_v42 = vmax.f32.f32 %v62_v38, %v54_v31  ;;  %v67_v43 = vmax.f32.f32 %v63_v39, %v55_v33 }
  0x1a   :  { %v68_v44 = vmax.f32.f32 %v64_v40, %v65_v41 }
  0x1b   :  { %v69_v45 = vmax.f32.f32 %v66_v42, %v67_v43 }
  0x1d   :  { %v70_v46 = vmax.f32.f32 %v68_v44, %v69_v45 }
  0x1f   :  { %71 = vmax.xlane.f32.xlu0 %v70_v46 }
  0xa8   :  { %v72_v47 = vpop.xlane.xlu0 %71 }
  0xa9   :  { %v73_v48 = vrot.slane %v72_v47, 4 }
  0xab   :  { %v74_v49 = vmax.f32 %v72_v47, %v73_v48 }
  0xad   :  { %v75_v50 = vrot.slane %v74_v49, 2 }
  0xaf   :  { %v76_v51 = vmax.f32 %v74_v49, %v75_v50 }
  0xb1   :  { %v77_v52 = vrot.slane %v76_v51, 1 }
  0xb3   :  { %v78_v53 = vmax.f32 %v76_v51, %v77_v52 }
  0xb5   :  { %321 = vpush %v78_v53 }
  0xe6   :  { %s322_s0 = spop %321 }
  0xe7   :  { %v80_v54 = vstv %s322_s0 }
  0xe8   :  { %v81_v55 = vmax.f32 %v80_v54, 0.0 }
  0xea   :  { %83 = vst.msk [vmem:[#allocation6] sm:$0x1] %vm82_vm0, %v81_v55  ;;  %374 = vrcp.f32 %v81_v55 }
  0xf7   :  { %v375_v56 = vpop.eup %374 }
  0xf8   :  { %v85_v57 = vmul.f32 127.0, %v375_v56 }
  0xfa   :  { %v102_v58 = vmul.f32 %v85_v57, %v463_v0  ;;  %v103_v59 = vmul.f32 %v85_v57, %v465_v1  ;;  %v104_v60 = vmul.f32 %v85_v57, %v467_v2  ;;  %v105_v61 = vmul.f32 %v85_v57, %v469_v3 }
  0xfb   :  { %v106_v62 = vmul.f32 %v85_v57, %v471_v4  ;;  %v107_v63 = vmul.f32 %v85_v57, %v473_v5  ;;  %v108_v9 = vmul.f32 %v85_v57, %v475_v6  ;;  %v109_v13 = vmul.f32 %v85_v57, %v477_v7 }
  0xfc   :  { %v110_v16 = vmul.f32 %v85_v57, %v479_v8  ;;  %v111_v17 = vmul.f32 %v85_v57, %v482_v10  ;;  %v112_v0 = vmul.f32 %v85_v57, %v484_v11  ;;  %v113_v1 = vmul.f32 %v85_v57, %v486_v12 }
  0xfd   :  { %v114_v20 = vmul.f32 %v85_v57, %v36_v14  ;;  %v115_v2 = vmul.f32 %v85_v57, %v37_v15  ;;  %v116_v21 = vmul.f32 %v85_v57, %v38_v18  ;;  %v117_v3 = vmul.f32 %v85_v57, %v39_v19 }
  0xfe   :  { %v287_v22 = vclamps-f32 %v102_v58, 127.0  ;;  %v289_v4 = vclamps-f32 %v103_v59, 127.0  ;;  %v291_v23 = vclamps-f32 %v104_v60, 127.0  ;;  %v293_v5 = vclamps-f32 %v105_v61, 127.0 }
  0xff   :  { %v295_v24 = vclamps-f32 %v106_v62, 127.0  ;;  %v297_v6 = vclamps-f32 %v107_v63, 127.0  ;;  %v299_v25 = vclamps-f32 %v108_v9, 127.0  ;;  %v301_v7 = vclamps-f32 %v109_v13, 127.0 }
 0x100   :  { %v325_v26 = vcvt.f32.s32 %v287_v22  ;;  %v328_v8 = vcvt.f32.s32 %v289_v4  ;;  %v331_v27 = vcvt.f32.s32 %v291_v23  ;;  %v334_v10 = vcvt.f32.s32 %v293_v5 }
 0x101   :  { %v337_v28 = vcvt.f32.s32 %v295_v24  ;;  %v340_v11 = vcvt.f32.s32 %v297_v6  ;;  %v343_v29 = vcvt.f32.s32 %v299_v25  ;;  %v346_v12 = vcvt.f32.s32 %v301_v7 }
 0x102   :  { %v303_v14 = vclamps-f32 %v110_v16, 127.0  ;;  %v305_v15 = vclamps-f32 %v111_v17, 127.0  ;;  %v307_v18 = vclamps-f32 %v112_v0, 127.0  ;;  %v309_v19 = vclamps-f32 %v113_v1, 127.0 }
 0x103   :  { %v311_v30 = vclamps-f32 %v114_v20, 127.0  ;;  %v313_v31 = vclamps-f32 %v115_v2, 127.0  ;;  %v315_v32 = vclamps-f32 %v116_v21, 127.0  ;;  %v317_v33 = vclamps-f32 %v117_v3, 127.0 }
 0x104   :  { %v349_v34 = vcvt.f32.s32 %v303_v14  ;;  %v352_v35 = vcvt.f32.s32 %v305_v15  ;;  %v355_v36 = vcvt.f32.s32 %v307_v18  ;;  %v358_v37 = vcvt.f32.s32 %v309_v19 }
 0x105   :  { %v361_v38 = vcvt.f32.s32 %v311_v30  ;;  %v364_v39 = vcvt.f32.s32 %v313_v31  ;;  %v367_v40 = vcvt.f32.s32 %v315_v32  ;;  %v370_v41 = vcvt.f32.s32 %v317_v33 }
 0x106   :  { %v214_v42 = vpack.c.b16 %v331_v27, %v325_v26  ;;  %v215_v43 = vpack.c.b16 %v343_v29, %v337_v28  ;;  %v217_v44 = vpack.c.b16 %v334_v10, %v328_v8  ;;  %v218_v45 = vpack.c.b16 %v346_v12, %v340_v11 }
 0x107   :  { %v220_v46 = vpack.c.b16 %v355_v36, %v349_v34  ;;  %v221_v47 = vpack.c.b16 %v367_v40, %v361_v38  ;;  %v223_v48 = vpack.c.b16 %v358_v37, %v352_v35  ;;  %v224_v49 = vpack.c.b16 %v370_v41, %v364_v39 }
 0x108   :  { %v216_v50 = vpack.c.b8 %v215_v43, %v214_v42  ;;  %v219_v51 = vpack.c.b8 %v218_v45, %v217_v44 }
 0x109   :  { %v222_v52 = vpack.c.b8 %v221_v47, %v220_v46  ;;  %v225_v53 = vpack.c.b8 %v224_v49, %v223_v48 }
 0x10a   :  { %226 = vst [vmem:[#allocation3] sm:$0xff] %v216_v50  ;;  %227 = vst [vmem:[#allocation3 + $0x8] sm:$0xff] %v219_v51 }
 0x10b   :  { %228 = vst [vmem:[#allocation3 + $0x10] sm:$0xff] %v222_v52  ;;  %229 = vst [vmem:[#allocation3 + $0x18] sm:$0xff] %v225_v53 }
 0x10c   :  { %407 = shalt.err (!%p404_p9)  }
 0x10d   :  { %240 = dma.vmem_to_hbm [thread:$0]  %s238_s15, 512, %s518_s1, [#allocation5] }
 0x10e   :  { %438 = dma.done.wait [#allocation5], 512 }
 0x10f   :  { %439 = vsyncadd [#allocation5], 4294966784  ;;  %s444_s19 = smov [#allocation6]  }
 0x110   :  { %s251_s20 = sshll.u32 %s444_s19, 4  ;;  %s252_s20 = int_to_ptr.vmem [resolvable:$true] %s251_s20 }
 0x111   :  { %s416_s21 = scalar_lea.vmem %s252_s20, 16  ;;  %s420_s22 = scalar_lea.vmem %s252_s20, 32 }
 0x112   :  { %p417_p10 = scmp.ne.s32.totalorder %s252_s20, %s416_s21  ;;  %p421_p11 = scmp.lt.s32.totalorder %s252_s20, %s252_s20 }
 0x113   :  { %p422_p12 = scmp.lt.s32.totalorder %s420_s22, %s416_s21 }
 0x115   :  { %p423_p13 = por %p422_p12, %p421_p11 }
 0x117   :  { %p424_p0 = pnand %p423_p13, %p417_p10 }
 0x119   :  { %427 = shalt.err (!%p424_p0)
}
 0x11a   :  { %254 = dma.vmem_to_hbm [thread:$0]  %s252_s20, 16, %s519_s2, [#allocation7]  }
 0x11b   :  { %440 = dma.done.wait [#allocation7], 16  }
 0x11c   :  { %441 = vsyncadd [#allocation7], 4294967280 }
 0x11d   :  { %258 = vsyncpa [#allocation7], 1 }
 0x11e   :  { %259 = vsyncmov [#allocation4] }
 0x121   :  { %s260_s1 = vpop.sfrf %259 }
 0x122   :  { %p319_p1 = scmp.ne.s32.totalorder %s260_s1, 0 }
 0x124   :  { %264 = shalt.err (%p319_p1)  }
 0x125   :  { %265 = vsyncmov [#allocation5] }
 0x128   :  { %s266_s25 = vpop.sfrf %265 }
 0x129   :  { %p320_p2 = scmp.ne.s32.totalorder %s266_s25, 0 }
 0x12b   :  { %270 = shalt.err (%p320_p2)  }

</bundles_post_ra>
